<compile_context>
chip_gen: v5e
topology: v5e:2x2
jax: 0.10.0
libtpu: 0.0.40
codegen_flags: <defaults>
</compile_context>

<pallas_src>
import numpy as np
import jax
import jax.numpy as jnp
from jax.experimental import pallas as pl
from jax.experimental.pallas import tpu as pltpu


# ------------------------------ Pallas kernel ------------------------------ #

def _make_kernel(*, bk, tn):
    """Kernel: accumulate x_block @ M_block over the banded k axis.

    M_block (bk, tn) is built on the fly from per-column metadata:
      column c gets weight (1-w[c]) at row row1[c] and w[c] at row row2[c];
      pad columns carry row1 = row2 = -1 and stay all-zero.
    """

    def kernel(tbl_ref, x_ref, row1_ref, row2_ref, w2_ref, o_ref, acc_ref):
        s, j, k = pl.program_id(0), pl.program_id(1), pl.program_id(2)

        @pl.when(k == 0)
        def _():
            acc_ref[...] = jnp.zeros_like(acc_ref)

        # First input row covered by the current x block (band start + k).
        row0 = (tbl_ref[s, j] + k) * bk
        rows = jax.lax.broadcasted_iota(jnp.int32, (bk, tn), 0) + row0
        j1 = row1_ref[...]                       # (1, tn) int32, -1 => pad col
        j2 = row2_ref[...]                       # (1, tn) int32
        w = w2_ref[...]                          # (1, tn) f32
        m_blk = (jnp.where(rows == j1, 1.0 - w, 0.0)
                 + jnp.where(rows == j2, w, 0.0))            # (bk, tn) f32

        acc_ref[...] += jnp.dot(x_ref[...].astype(jnp.float32), m_blk,
                                preferred_element_type=jnp.float32)

        @pl.when(k == pl.num_programs(2) - 1)
        def _():
            o_ref[...] = acc_ref[...].astype(o_ref.dtype)

    return kernel


def _timescale_pallas(x, row1, row2, w2, band_tbl, *, tn, bk, num_kb):
    """out[s] = x[s] @ M[s] with M generated in-kernel; banded over k.

    x: (S, m, L) float; row1/row2: (S, 1, L) int32; w2: (S, 1, L) f32;
    band_tbl: (S, L//tn) int32 band-start (in bk-sized blocks).
    """
    n_src, m, length = x.shape
    num_j = length // tn
    kernel = _make_kernel(bk=bk, tn=tn)

    return pl.pallas_call(
        kernel,
        out_shape=jax.ShapeDtypeStruct((n_src, m, length), x.dtype),
        grid_spec=pltpu.PrefetchScalarGridSpec(
            num_scalar_prefetch=1,
            grid=(n_src, num_j, num_kb),
            in_specs=[
                # x: data-dependent block index along time = band start + k.
                pl.BlockSpec((None, m, bk),
                             lambda s, j, k, tbl: (s, 0, tbl[s, j] + k)),
                # Per-output-column metadata: resident across the k axis.
                pl.BlockSpec((None, 1, tn), lambda s, j, k, tbl: (s, 0, j)),
                pl.BlockSpec((None, 1, tn), lambda s, j, k, tbl: (s, 0, j)),
                pl.BlockSpec((None, 1, tn), lambda s, j, k, tbl: (s, 0, j)),
            ],
            out_specs=pl.BlockSpec((None, m, tn),
                                   lambda s, j, k, tbl: (s, 0, j)),
            scratch_shapes=[pltpu.VMEM((m, tn), jnp.float32)],
        ),
        compiler_params=pltpu.CompilerParams(
            dimension_semantics=("parallel", "parallel", "arbitrary")),
    )(band_tbl, x, row1, row2, w2)


# ------------------------ TimeScale parameterization ----------------------- #

def _resample_columns(length, scaling, pad_rng):
    """Per output column: its two source rows and lerp weight (torch semantics).

    Returns row1, row2 (int32, -1 for zero-pad columns) and w2 (f32 weight of
    row2).  Matches the reference: gather+lerp, center-crop if longer, random
    left zero-pad if shorter.  O(L) host work only.
    """
    output_size = int(length * scaling)
    ref = np.arange(output_size, dtype=np.float32) / np.float32(scaling)
    ref1 = ref.astype(np.int64)                       # trunc == floor (ref >= 0)
    ref2 = np.minimum(ref1 + 1, length - 1)
    r = (ref - ref1.astype(np.float32)).astype(np.float32)

    row1 = np.full(length, -1, dtype=np.int32)
    row2 = np.full(length, -1, dtype=np.int32)
    w2 = np.zeros(length, dtype=np.float32)
    if output_size > length:
        offset = (output_size - length) // 2          # center crop
        sel = np.arange(length) + offset
        row1[:], row2[:], w2[:] = ref1[sel], ref2[sel], r[sel]
    else:
        diff = length - output_size
        pad_left = int(pad_rng.uniform() * diff)
        cols = np.arange(output_size) + pad_left
        row1[cols], row2[cols], w2[cols] = ref1, ref2, r
    return row1, row2, w2


def _pick_tn(length, n_sources):
    """Lane-dense output tile; prefer >= 4 steps on the parallel grid axes."""
    if length % 128 != 0:
        return length                                  # full-dim escape hatch
    cands = [t for t in range(128, min(length, 512) + 1, 128) if length % t == 0]
    ok = [t for t in cands if n_sources * (length // t) >= 4]
    return max(ok) if ok else min(cands)


def _plan_band(row1_all, row2_all, length, tn):
    """Static band-block count and per-(source, tile) band-start table."""
    n_src = row1_all.shape[0]
    num_j = length // tn
    if length % 128 != 0:
        return length, 1, np.zeros((n_src, num_j), dtype=np.int32)

    bk = 128
    n_blocks = length // bk
    width = 1
    kb_lo = np.zeros((n_src, num_j), dtype=np.int64)
    for s in range(n_src):
        for j in range(num_j):
            r1 = row1_all[s, j * tn:(j + 1) * tn]
            r2 = row2_all[s, j * tn:(j + 1) * tn]
            valid = r1 >= 0
            if not valid.any():                        # all-pad tile
                kb_lo[s, j] = 0
                continue
            lo_b = int(r1[valid].min()) // bk
            hi_b = int(r2[valid].max()) // bk
            kb_lo[s, j] = lo_b
            width = max(width, hi_b - lo_b + 1)
    num_kb = min(width, n_blocks)
    tbl = np.minimum(kb_lo, n_blocks - num_kb).astype(np.int32)
    return bk, num_kb, tbl


class TimeScale:
    """JAX/Pallas port of the biodenoising TimeScale augmentation (forward)."""

    def __init__(self, scale=2.0, target=1, rngnp=None, seed=42):
        self.scale = scale
        self.target = target
        self.seed = seed
        self.rngnp = rngnp if rngnp is not None else np.random.default_rng(seed=seed)
        self.pad_rng = np.random.default_rng(seed=seed + 1)

    def __call__(self, wav):
        sources, batch, channels, length = wav.shape
        targets = set(range(sources)) if self.target == -1 else {self.target}
        m = batch * channels

        # O(L) per-source metadata on host (same RNG draw order as the torch
        # reference).  Non-target sources get the identity map so one fused
        # kernel rewrites the whole wav (no extra XLA .at[].set copy).
        row1 = np.empty((sources, length), dtype=np.int32)
        row2 = np.empty((sources, length), dtype=np.int32)
        w2 = np.zeros((sources, length), dtype=np.float32)
        ident = np.arange(length, dtype=np.int32)
        for s in range(sources):
            if s in targets:
                scaling = float(np.power(self.scale, self.rngnp.uniform(-1, 1)))
                row1[s], row2[s], w2[s] = _resample_columns(
                    length, scaling, self.pad_rng)
            else:
                row1[s], row2[s], w2[s] = ident, ident, 0.0

        tn = _pick_tn(length, sources)
        bk, num_kb, tbl = _plan_band(row1, row2, length, tn)

        out = _timescale_pallas(
            wav.reshape(sources, m, length),
            jnp.asarray(row1[:, None, :]),
            jnp.asarray(row2[:, None, :]),
            jnp.asarray(w2[:, None, :]),
            jnp.asarray(tbl),
            tn=tn, bk=bk, num_kb=num_kb)
        return out.reshape(sources, batch, channels, length)


# ------------------------------- reference --------------------------------- #

def reference_timescale(signal, scaling, pad_rng):
    """Pure-numpy replica of the torch forward for one source (f32)."""
    length = signal.shape[-1]
    output_size = int(length * scaling)
    ref = np.arange(output_size, dtype=np.float32) / np.float32(scaling)
    ref1 = ref.astype(np.int64)
    ref2 = np.minimum(ref1 + 1, length - 1)
    r = ref - ref1.astype(np.float32)
    scaled = signal[..., ref1] * (1.0 - r) + signal[..., ref2] * r
    if output_size > length:
        off = (output_size - length) // 2
        return scaled[..., off:off + length]
    diff = length - output_size
    pad_left = int(pad_rng.uniform() * diff)
    out = np.zeros(signal.shape[:-1] + (length,), dtype=np.float32)
    out[..., pad_left:pad_left + output_size] = scaled
    return out


# --------------------------------- main ------------------------------------ #

if __name__ == "__main__":
    key = jax.random.PRNGKey(0)
    sources, batch, channels, length = 2, 2, 4, 256
    wav = jax.random.normal(key, (sources, batch, channels, length),
                            dtype=jnp.float32)
    ATOL = RTOL = 2e-3                      # f32 path, only MXU rounding slack

    # --- default single target (other source passes through the kernel) ---- #
    ts = TimeScale(scale=2.0, target=1, seed=42)
    out = jax.block_until_ready(ts(wav))
    assert out.shape == wav.shape
    assert np.allclose(np.asarray(out[0]), np.asarray(wav[0]),
                       atol=ATOL, rtol=RTOL)

    rng_check = np.random.default_rng(seed=42)
    pad_check = np.random.default_rng(seed=43)
    scaling = float(np.power(2.0, rng_check.uniform(-1, 1)))
    ref_t = reference_timescale(np.asarray(wav[1]), scaling, pad_check)
    assert np.allclose(np.asarray(out[1]), ref_t, atol=ATOL, rtol=RTOL)

    # --- all targets, one fused call --------------------------------------- #
    ts_all = TimeScale(scale=2.0, target=-1, seed=7)
    out_all = jax.block_until_ready(ts_all(wav))
    assert out_all.shape == wav.shape
    rng_all = np.random.default_rng(seed=7)
    pad_all = np.random.default_rng(seed=8)
    for s in range(sources):
        scl = float(np.power(2.0, rng_all.uniform(-1, 1)))
        ref_s = reference_timescale(np.asarray(wav[s]), scl, pad_all)
        assert np.allclose(np.asarray(out_all[s]), ref_s, atol=ATOL, rtol=RTOL)

    # --- larger length exercising the banded k walk (band < full L) -------- #
    class _FixedUniform:                     # deterministic scaling draw
        def __init__(self, v):
            self.v = v

        def uniform(self, lo, hi):
            return self.v

    length2 = 1024
    wav2 = jax.random.normal(jax.random.PRNGKey(1),
                             (sources, batch, channels, length2),
                             dtype=jnp.float32)
    ts_band = TimeScale(scale=2.0, target=0, rngnp=_FixedUniform(0.8), seed=11)
    out2 = jax.block_until_ready(ts_band(wav2))
    pad_band = np.random.default_rng(seed=12)          # unused on the crop path
    ref_band = reference_timescale(np.asarray(wav2[0]),
                                   float(np.power(2.0, 0.8)), pad_band)
    assert np.allclose(np.asarray(out2[0]), ref_band, atol=ATOL, rtol=RTOL)
    assert np.allclose(np.asarray(out2[1]), np.asarray(wav2[1]),
                       atol=ATOL, rtol=RTOL)

    print("KERNEL_OK")
</pallas_src>

<mosaic_0001>
module attributes {stable_mosaic.version = 11 : i64} {
  func.func @kernel(%arg0: i32, %arg1: i32, %arg2: i32, %arg3: memref<2x2xi32, #tpu.memory_space<smem>>, %arg4: memref<1x8x128xf32, #tpu.memory_space<vmem>>, %arg5: memref<1x1x128xi32, #tpu.memory_space<vmem>>, %arg6: memref<1x1x128xi32, #tpu.memory_space<vmem>>, %arg7: memref<1x1x128xf32, #tpu.memory_space<vmem>>, %arg8: memref<1x8x128xf32, #tpu.memory_space<vmem>>, %arg9: memref<8x128xf32, #tpu.memory_space<vmem>>) attributes {dimension_semantics = [#tpu.dimension_semantics<parallel>, #tpu.dimension_semantics<parallel>, #tpu.dimension_semantics<arbitrary>], iteration_bounds = array<i64: 2, 2, 2>, scalar_prefetch = 1 : i64, scratch_operands = 1 : i64, tpu.core_type = #tpu.core_type<tc>, window_params = [{transform_indices = @transform_0, window_bounds = array<i64: 1, 8, 128>}, {transform_indices = @transform_1, window_bounds = array<i64: 1, 1, 128>}, {transform_indices = @transform_2, window_bounds = array<i64: 1, 1, 128>}, {transform_indices = @transform_3, window_bounds = array<i64: 1, 1, 128>}, {transform_indices = @transform_4, window_bounds = array<i64: 1, 8, 128>}]} {
    %c0_i32 = arith.constant 0 : i32
    %0 = arith.cmpi eq, %arg2, %c0_i32 : i32
    %1 = arith.extui %0 : i1 to i32
    %c0_i32_0 = arith.constant 0 : i32
    %2 = arith.cmpi ne, %1, %c0_i32_0 : i32
    scf.if %2 {
      %cst_20 = arith.constant 0.000000e+00 : f32
      %41 = vector.broadcast %cst_20 : f32 to vector<8x128xf32>
      %c0_21 = arith.constant 0 : index
      %c0_22 = arith.constant 0 : index
      %42 = vector.load %arg9[%c0_21, %c0_22] : memref<8x128xf32, #tpu.memory_space<vmem>>, vector<8x128xf32>
      tpu.vector_store %arg9[%c0_21, %c0_22], %41 {strides = array<i32>} : memref<8x128xf32, #tpu.memory_space<vmem>>, vector<8x128xf32>,
    } else {
    }
    %3 = arith.index_cast %arg0 : i32 to index
    %4 = arith.index_cast %arg1 : i32 to index
    %5 = memref.load %arg3[%3, %4] : memref<2x2xi32, #tpu.memory_space<smem>>
    %6 = arith.addi %5, %arg2 : i32
    %c128_i32 = arith.constant 128 : i32
    %7 = arith.muli %6, %c128_i32 : i32
    %8 = tpu.iota {dimensions = array<i32: 0>} : vector<128x128xi32>
    %9 = vector.broadcast %7 : i32 to vector<128x128xi32>
    %10 = arith.addi %8, %9 : vector<128x128xi32>
    %c0 = arith.constant 0 : index
    %c0_1 = arith.constant 0 : index
    %c0_2 = arith.constant 0 : index
    %11 = vector.load %arg5[%c0, %c0_1, %c0_2] : memref<1x1x128xi32, #tpu.memory_space<vmem>>, vector<1x1x128xi32>
    %12 = vector.shape_cast %11 : vector<1x1x128xi32> to vector<1x128xi32>
    %c0_3 = arith.constant 0 : index
    %c0_4 = arith.constant 0 : index
    %c0_5 = arith.constant 0 : index
    %13 = vector.load %arg6[%c0_3, %c0_4, %c0_5] : memref<1x1x128xi32, #tpu.memory_space<vmem>>, vector<1x1x128xi32>
    %14 = vector.shape_cast %13 : vector<1x1x128xi32> to vector<1x128xi32>
    %c0_6 = arith.constant 0 : index
    %c0_7 = arith.constant 0 : index
    %c0_8 = arith.constant 0 : index
    %15 = vector.load %arg7[%c0_6, %c0_7, %c0_8] : memref<1x1x128xf32, #tpu.memory_space<vmem>>, vector<1x1x128xf32>
    %16 = vector.shape_cast %15 : vector<1x1x128xf32> to vector<1x128xf32>
    %17 = vector.broadcast %12 : vector<1x128xi32> to vector<128x128xi32>
    %18 = arith.cmpi eq, %10, %17 : vector<128x128xi32>
    %cst = arith.constant 1.000000e+00 : f32
    %19 = vector.broadcast %cst : f32 to vector<1x128xf32>
    %20 = arith.subf %19, %16 : vector<1x128xf32>
    %cst_9 = arith.constant 0.000000e+00 : f32
    %21 = vector.shape_cast %20 : vector<1x128xf32> to vector<1x128xf32>
    %22 = vector.broadcast %21 : vector<1x128xf32> to vector<128x128xf32>
    %23 = vector.broadcast %cst_9 : f32 to vector<128x128xf32>
    %24 = arith.select %18, %22, %23 : vector<128x128xi1>, vector<128x128xf32>
    %25 = vector.broadcast %14 : vector<1x128xi32> to vector<128x128xi32>
    %26 = arith.cmpi eq, %10, %25 : vector<128x128xi32>
    %cst_10 = arith.constant 0.000000e+00 : f32
    %27 = vector.shape_cast %16 : vector<1x128xf32> to vector<1x128xf32>
    %28 = vector.broadcast %27 : vector<1x128xf32> to vector<128x128xf32>
    %29 = vector.broadcast %cst_10 : f32 to vector<128x128xf32>
    %30 = arith.select %26, %28, %29 : vector<128x128xi1>, vector<128x128xf32>
    %31 = arith.addf %24, %30 : vector<128x128xf32>
    %c0_11 = arith.constant 0 : index
    %c0_12 = arith.constant 0 : index
    %32 = vector.load %arg9[%c0_11, %c0_12] : memref<8x128xf32, #tpu.memory_space<vmem>>, vector<8x128xf32>
    %c0_13 = arith.constant 0 : index
    %c0_14 = arith.constant 0 : index
    %c0_15 = arith.constant 0 : index
    %33 = vector.load %arg4[%c0_13, %c0_14, %c0_15] : memref<1x8x128xf32, #tpu.memory_space<vmem>>, vector<1x8x128xf32>
    %34 = vector.shape_cast %33 : vector<1x8x128xf32> to vector<8x128xf32>
    %cst_16 = arith.constant dense<0.000000e+00> : vector<8x128xf32>
    %35 = tpu.matmul %34, %31, %cst_16 {dimension_numbers = #tpu.dot_dimension_numbers<[1], [0], [0], [1], [0, 0, 1, 1], [], []>} : vector<8x128xf32>, vector<128x128xf32>, vector<8x128xf32> -> vector<8x128xf32>
    %36 = arith.addf %32, %35 : vector<8x128xf32>
    %c0_17 = arith.constant 0 : index
    %c0_18 = arith.constant 0 : index
    %37 = vector.load %arg9[%c0_17, %c0_18] : memref<8x128xf32, #tpu.memory_space<vmem>>, vector<8x128xf32>
    tpu.vector_store %arg9[%c0_17, %c0_18], %36 {strides = array<i32>} : memref<8x128xf32, #tpu.memory_space<vmem>>, vector<8x128xf32>,
    %c1_i32 = arith.constant 1 : i32
    %38 = arith.cmpi eq, %arg2, %c1_i32 : i32
    %39 = arith.extui %38 : i1 to i32
    %c0_i32_19 = arith.constant 0 : i32
    %40 = arith.cmpi ne, %39, %c0_i32_19 : i32
    scf.if %40 {
      %c0_20 = arith.constant 0 : index
      %c0_21 = arith.constant 0 : index
      %41 = vector.load %arg9[%c0_20, %c0_21] : memref<8x128xf32, #tpu.memory_space<vmem>>, vector<8x128xf32>
      %c0_22 = arith.constant 0 : index
      %c0_23 = arith.constant 0 : index
      %c0_24 = arith.constant 0 : index
      %42 = vector.load %arg8[%c0_22, %c0_23, %c0_24] : memref<1x8x128xf32, #tpu.memory_space<vmem>>, vector<1x8x128xf32>
      %43 = vector.shape_cast %42 : vector<1x8x128xf32> to vector<8x128xf32>
      %44 = vector.shape_cast %41 : vector<8x128xf32> to vector<1x8x128xf32>
      tpu.vector_store %arg8[%c0_22, %c0_23, %c0_24], %44 {strides = array<i32>} : memref<1x8x128xf32, #tpu.memory_space<vmem>>, vector<1x8x128xf32>,
    } else {
    }
    return
  }
  func.func @transform_0(%arg0: i32, %arg1: i32, %arg2: i32, %arg3: memref<2x2xi32, #tpu.memory_space<smem>>) -> (i32, i32, i32) {
    %0 = arith.index_cast %arg0 : i32 to index
    %1 = arith.index_cast %arg1 : i32 to index
    %2 = memref.load %arg3[%0, %1] : memref<2x2xi32, #tpu.memory_space<smem>>
    %3 = arith.addi %2, %arg2 : i32
    %c0_i32 = arith.constant 0 : i32
    %c0_i32_0 = arith.constant 0 : i32
    return %arg0, %c0_i32, %3 : i32, i32, i32
  }
  func.func @transform_1(%arg0: i32, %arg1: i32, %arg2: i32, %arg3: memref<2x2xi32, #tpu.memory_space<smem>>) -> (i32, i32, i32) {
    %c0_i32 = arith.constant 0 : i32
    %c0_i32_0 = arith.constant 0 : i32
    return %arg0, %c0_i32, %arg1 : i32, i32, i32
  }
  func.func @transform_2(%arg0: i32, %arg1: i32, %arg2: i32, %arg3: memref<2x2xi32, #tpu.memory_space<smem>>) -> (i32, i32, i32) {
    %c0_i32 = arith.constant 0 : i32
    %c0_i32_0 = arith.constant 0 : i32
    return %arg0, %c0_i32, %arg1 : i32, i32, i32
  }
  func.func @transform_3(%arg0: i32, %arg1: i32, %arg2: i32, %arg3: memref<2x2xi32, #tpu.memory_space<smem>>) -> (i32, i32, i32) {
    %c0_i32 = arith.constant 0 : i32
    %c0_i32_0 = arith.constant 0 : i32
    return %arg0, %c0_i32, %arg1 : i32, i32, i32
  }
  func.func @transform_4(%arg0: i32, %arg1: i32, %arg2: i32, %arg3: memref<2x2xi32, #tpu.memory_space<smem>>) -> (i32, i32, i32) {
    %c0_i32 = arith.constant 0 : i32
    %c0_i32_0 = arith.constant 0 : i32
    return %arg0, %c0_i32, %arg1 : i32, i32, i32
  }
}

</mosaic_0001>

<bundles_post_ra>
// kernel: tpu_custom_call.1
= control target key start
LH: loop header
LB: loop body
LE: loop exit
PB: predicated region body
PF: predicated region fallthrough
CT: control target
= control target key end

     0   :  { %s1189_s21 = smov [#allocation4]   ;;  %s1682_s0 = inlined_call_operand.hbm [shape: s32[2,2], index: 0, kind: input, shape index: {}]   ;;  %s1683_s1 = inlined_call_operand.hbm [shape: f32[2,8,256], index: 1, kind: input, shape index: {}]   ;;  %s1684_s2 = inlined_call_operand.hbm [shape: s32[2,1,256], index: 2, kind: input, shape index: {}]   ;;  %s1685_s3 = inlined_call_operand.hbm [shape: s32[2,1,256], index: 3, kind: input, shape index: {}]   ;;  %s1686_s4 = inlined_call_operand.hbm [shape: f32[2,1,256], index: 4, kind: input, shape index: {}]   ;;  %s1687_s5 = inlined_call_operand.hbm [shape: f32[2,8,256], index: 5, kind: output, shape index: {}]  }
   0x1   :  { %1708 = sst [smem:[#allocation38_spill]] %s1684_s2  ;;  %s11_s20 = sshll.u32 %s1682_s0, 4  ;;  %s12_s20 = int_to_ptr.hbm [resolvable:$true] %s11_s20 }
   0x2   :  { %1709 = sst [smem:[#allocation39_spill]] %s1685_s3 }
   0x3   :  { %1710 = sst [smem:[#allocation40_spill]] %s1687_s5 }
   0x4   :  { %14 = dma.hbm_to_smem %s12_s20, 32, %s1189_s21, [#allocation3] }
   0x5   :  { %1119 = dma.done.wait [#allocation3], 32 }
   0x6   :  { %1120 = vsyncadd [#allocation3], 4294967264 }
   0x7   :  { %17 = sfence }
   0x8   :  { %18 = vsyncpa [#allocation6], 0 }
   0x9   :  { %20 = vsyncpa [#allocation6 + $0x1], 0 }
   0xa   :  { %21 = vsyncpa [#allocation9], 0 }
   0xb   :  { %23 = vsyncpa [#allocation9 + $0x1], 0 }
   0xc   :  { %24 = vsyncpa [#allocation12], 0 }
   0xd   :  { %26 = vsyncpa [#allocation12 + $0x1], 0 }
   0xe   :  { %27 = vsyncpa [#allocation7], 0 }
   0xf   :  { %29 = vsyncpa [#allocation7 + $0x1], 0  ;;  %s1224_s22 = smov 0   ;;  %s1226_s23 = smov 0  }
  0x10   :  { %s1228_s24 = smov 0   ;;  %s1230_s0 = smov 0  }
  0x11   :  { %s1232_s25 = smov 0   ;;  %s1234_s26 = smov 0  }
  0x12   :  { %s1236_s27 = smov 0   ;;  %s1238_s28 = smov 0  }
  0x13   :  { %s1240_s29 = smov 0   ;;  %s1242_s30 = smov 0  }
  0x14   :  { %s1244_s6 = smov 0   ;;  %s1246_s7 = smov 0  }
  0x15   :  { %s1248_s8 = smov 0  }
  0x16 LB: > { %1711 = sst [smem:[#allocation21_spill]] %s1139_s22  ;;  %s1290_s9 = sadd.s32 4294967295, %s1187_s8   ;;  %s1187_s8 = sphi %s1248_s8, %s35_s8   ;;  %s1183_s7 = sphi %s1246_s7, %s1773_s7   ;;  %s1179_s6 = sphi %s1244_s6, %s1764_s6   ;;  %s1175_s30 = sphi %s1242_s30, %s1772_s30   ;;  %s1171_s29 = sphi %s1240_s29, %s1771_s29   ;;  %s1167_s28 = sphi %s1238_s28, %s1762_s28   ;;  %s1163_s27 = sphi %s1236_s27, %s1770_s27   ;;  %s1159_s26 = sphi %s1234_s26, %s1769_s26   ;;  %s1155_s25 = sphi %s1232_s25, %s1768_s25   ;;  %s1151_s0 = sphi %s1230_s0, %s1760_s0   ;;  %s1147_s24 = sphi %s1228_s24, %s1767_s24   ;;  %s1143_s23 = sphi %s1226_s23, %s1766_s23   ;;  %s1139_s22 = sphi %s1224_s22, %s1758_s22  }
  0x17   : > { %1712 = sst [smem:[#allocation22_spill]] %s1143_s23  ;;  %s741_s10 = sadd.s32 4294967294, %s1187_s8  }
  0x18   : > { %1713 = sst [smem:[#allocation23_spill]] %s1155_s25  ;;  %p95_p0 = scmp.eq.s32.totalorder %s1290_s9, 0 }
  0x19   : > { %1714 = sst [smem:[#allocation24_spill]] %s1163_s27  ;;  %p89_p1 = scmp.eq.s32.totalorder %s1187_s8, 0 }
  0x1a   : > { %1715 = sst [smem:[#allocation25_spill]] %s1167_s28  ;;  %p116_p2 = scmp.ne.s32.totalorder %s1147_s24, %s1143_s23 }
  0x1b   : > { %1716 = sst [smem:[#allocation26_spill]] %s1171_s29  ;;  %p122_p3 = scmp.ne.s32.totalorder %s1143_s23, %s1139_s22 }
  0x1c   : > { %1717 = sst [smem:[#allocation27_spill]] %s1179_s6  ;;  %p204_p4 = scmp.eq.s32.totalorder %s1290_s9, 7 }
  0x1d   : > { %1718 = sst [smem:[#allocation28_spill]] %s1290_s9  ;;  %p1302_p5 = por %p116_p2, %p89_p1 }
  0x1e   : > { %p210_p6 = scmp.eq.s32.totalorder %s741_s10, 7  ;;  %p1308_p7 = por %p122_p3, %p95_p0 }
  0x1f   : > { %p1312_p8 = por %p204_p4, %p116_p2  ;;  %p796_p10 = scmp.lt.s32.totalorder %s1187_s8, 8 }
  0x20   : > { %s1720_s12 = scalar_select %p1308_p7, 1, 0 }
  0x21   : > { %s1722_s13 = scalar_select %p1312_p8, 1, 0 }
  0x22   : > { %1721 = sst [smem:[#allocation29_spill]] %s1720_s12  ;;  %p1316_p9 = por %p210_p6, %p122_p3 }
  0x23   : > { %1723 = sst [smem:[#allocation30_spill]] %s1722_s13  ;;  %s1691_s15 = sshll.u32 %s1183_s7, 1 }
  0x24   : > { %s1724_s14 = scalar_select %p1316_p9, 1, 0 }
  0x25   : > { %s260_s16 = sand.u32 1, %s1187_s8   ;;  %s1324_s17 = sand.u32 1, %s1147_s24  }
  0x26   : > { %1725 = sst [smem:[#allocation31_spill]] %s1724_s14  ;;  %s1329_s18 = sadd.s32 %s1179_s6, %s1691_s15 }
  0x27   : > { %s263_s19 = scalar_lea.vmem [#allocation8], %s1324_s17  ;;  %s1726_s2 = sld [smem:[#allocation38_spill]] }
  0x28   : > { %s272_s20 = sshll.u32 %s263_s19, 4  ;;  %p1340_p11 = pnand %p796_p10, %p1302_p5  ;;  %s273_s20 = int_to_ptr.vmem [resolvable:$true] %s272_s20 }
  0x29   : > { %p753_p12 = scmp.ge.s32.totalorder %s1187_s8, 1  ;;  %p315_p13 = scmp.lt.s32.totalorder %s1187_s8, 9 }
  0x2a   : > { %s1346_s19 = scalar_lea.sflag [#allocation9], %s260_s16  ;;  %s47_s11 = sadd.s32 1, %s1175_s30 }
  0x2b   : > { %p1351_p2 = pnand %p753_p12, %p315_p13  ;;  %p48_p3 = scmp.ge.s32.totalorder %s47_s11, 2 }
  0x2c   : > { %s50_s21 = sadd.s32 1, %s1179_s6  ;;  %s54_s10 = sadd.s32 1, %s1183_s7 }
  0x2d   : > { %s268_s14 = scalar_lea.hbm %s1726_s2, %s1329_s18  ;;  %s58_s15 = sshra.s32 %s1179_s6, 7 }
  0x2e   : > { %s270_s22 = sshll.u32 %s268_s14, 4  ;;  %s1775_s11 = smov (%p48_p3, %s47_s11), 0  ;;  %s271_s22 = int_to_ptr.hbm [resolvable:$true] %s270_s22 }
  0x2f   : > { %785 = dma.hbm_to_vmem [thread:$0]  (!%p1340_p11), %s271_s22, 16, %s273_s20, %s1346_s19  }
  0x30   : > { %1729 = sst [smem:[#allocation32_spill]] %s1775_s11  ;;  %s1777_s21 = smov (!%p48_p3, %s50_s21), %s1179_s6 }
  0x31   : > { %s60_s16 = sadd.s32 %s1183_s7, %s58_s15  ;;  %s63_s22 = sand.u32 127, %s1179_s6 }
  0x32   : > { %p52_p4 = scmp.ge.s32.totalorder %s1777_s21, 2  ;;  %s742_s20 = sshll.u32 %s60_s16, 7 }
  0x33   : > { %s1364_s2 = sadd.s32 %s742_s20, %s63_s22  ;;  %s109_s13 = sadd.s32 1, %s1147_s24 }
  0x34   : > { %s1779_s21 = smov (%p52_p4, %s1777_s21), 0  ;;  %s1781_s10 = smov (!%p52_p4, %s54_s10), %s1183_s7 }
  0x35   : > { %1730 = sst [smem:[#allocation33_spill]] %s1779_s21  ;;  %p56_p5 = scmp.ge.s32.totalorder %s1781_s10, 2 }
  0x36   : > { %s65_s29 = sld [smem:[#allocation4 + %s1364_s2]]  ;;  %s67_s15 = sshra.s32 %s1779_s21, 7 }
  0x37   : > { %p88_p6 = scmp.ne.s32.totalorder %s1159_s26, %s1155_s25  ;;  %p94_p12 = scmp.ne.s32.totalorder %s1155_s25, %s1151_s0 }
  0x38   : > { %s1783_s10 = smov (%p56_p5, %s1781_s10), 0  ;;  %s72_s16 = sand.u32 127, %s1779_s21 }
  0x39   : > { %1731 = sst [smem:[#allocation34_spill]] %s1783_s10  ;;  %p1381_p13 = por %p95_p0, %p94_p12 }
  0x3a   : > { %s69_s20 = sadd.s32 %s67_s15, %s1783_s10  ;;  %s76_s28 = ssub.s32 %s1183_s7, %s1783_s10 }
  0x3b   : > { %s1732_s22 = scalar_select %p1381_p13, 1, 0 }
  0x3c   : > { %s743_s27 = sshll.u32 %s69_s20, 7  ;;  %p1390_p3 = por %p89_p1, %p88_p6 }
  0x3d   : > { %1733 = sst [smem:[#allocation35_spill]] %s1732_s22  ;;  %s73_s12 = sadd.s32 %s743_s27, %s72_s16 }
  0x3e   : > { %s105_s23 = ssub.s32 %s1179_s6, %s1779_s21  ;;  %s74_s25 = sld [smem:[#allocation4 + %s73_s12]] }
  0x3f   : > { %s106_s9 = sor.u32 %s105_s23, %s76_s28  ;;  %s1705_s15 = sand.u32 1, %s1159_s26  }
  0x40   : > { %p107_p0 = scmp.eq.s32.totalorder %s106_s9, 0  ;;  %s66_s10 = sadd.s32 %s1175_s30, %s65_s29 }
  0x41   : > { %s746_s20 = sshll.u32 %s1705_s15, 3  ;;  %p1407_p1 = pnand %p796_p10, %p1390_p3 }
  0x42   : > { %s1401_s22 = scalar_select %p107_p0, %s1147_s24, %s109_s13  }
  0x43   : > { %s765_s23 = scalar_select %p1390_p3, [#allocation4], [#allocation14] }
  0x44   : > { %1735 = sst [smem:[#allocation36_spill]] %s1401_s22  ;;  %s75_s12 = sadd.s32 %s74_s25, %s1775_s11 }
  0x45   : > { %s81_s9 = sadd.s32 1, %s1159_s26  ;;  %s77_s16 = ssub.s32 %s66_s10, %s75_s12 }
  0x46   : > { %s234_s29 = scalar_lea.vmem [#allocation5], %s746_s20  ;;  %s78_s13 = sor.u32 %s77_s16, %s76_s28 }
  0x47   : > { %s1415_s21 = sshll.u32 %s234_s29, 4  ;;  %p79_p4 = scmp.eq.s32.totalorder %s78_s13, 0  ;;  %s254_s21 = int_to_ptr.vmem [resolvable:$true] %s1415_s21 }
  0x48   : > { %s1785_s2 = smov (!%p1390_p3, %s1364_s2), 0  ;;  %s1787_s23 = smov (!%p796_p10, %s765_s23), [#allocation15] }
  0x49   : > { %s1421_s15 = scalar_select %p79_p4, %s1159_s26, %s81_s9  }
  0x4a   : > { %s1789_s2 = smov (!%p796_p10, %s1785_s2), 0  ;;  %s1738_s3 = sld [smem:[#allocation39_spill]] }
  0x4b   : > { %1737 = sst [smem:[#allocation37_spill]] %s1421_s15  ;;  %s282_s12 = scalar_lea.vmem [#allocation10], %s1324_s17 }
  0x4c   : > { %s291_s29 = sshll.u32 %s282_s12, 4  ;;  %s242_s11 = sld [smem:[%s1787_s23 + %s1789_s2]]  ;;  %s292_s29 = int_to_ptr.vmem [resolvable:$true] %s291_s29 }
  0x4d   : > { %s306_s16 = scalar_lea.hbm %s1686_s4, %s1329_s18  ;;  %s301_s6 = scalar_lea.vmem [#allocation11], %s1324_s17 }
  0x4e   : > { %s310_s15 = sshll.u32 %s301_s6, 4  ;;  %s1739_s25 = sshll.u32 %s1183_s7, 1  ;;  %s311_s15 = int_to_ptr.vmem [resolvable:$true] %s310_s15 }
  0x4f   : > { %p983_p5 = pneg %p1407_p1  ;;  %s986_s0 = scalar_lea.hbm %s1683_s1, 32 }
  0x50   : > { %s287_s20 = scalar_lea.hbm %s1738_s3, %s1329_s18  ;;  %s308_s3 = sshll.u32 %s306_s16, 4  ;;  %s309_s3 = int_to_ptr.hbm [resolvable:$true] %s308_s3 }
  0x51   : > { %s289_s28 = sshll.u32 %s287_s20, 4  ;;  %s290_s28 = int_to_ptr.hbm [resolvable:$true] %s289_s28 }
  0x52   : > { %788 = dma.hbm_to_vmem [thread:$0]  (!%p1340_p11), %s290_s28, 16, %s292_s29, %s1346_s19  }
  0x53   : > { %s243_s13 = sadd.s32 %s1175_s30, %s242_s11  ;;  %s1740_s19 = sand.u32 1, %s1159_s26  }
  0x54   : > { %s247_s10 = sadd.s32 %s1739_s25, %s243_s13  ;;  %s231_s29 = scalar_lea.sflag [#allocation6], %s1740_s19 }
  0x55   : > { %s749_s12 = sshll.u32 %s247_s10, 3 }
  0x56   : > { %s249_s20 = scalar_lea.hbm %s1683_s1, %s749_s12 }
  0x57   : > { %s251_s22 = sshll.u32 %s249_s20, 4  ;;  %s252_s22 = int_to_ptr.hbm [resolvable:$true] %s251_s22 }
  0x58   : > { %s979_s18 = sshra.s32 %s252_s22, 4  ;;  %s980_s18 = int_to_ptr.hbm [resolvable:$true] %s979_s18 }
  0x59   : > { %s981_s11 = scalar_lea.hbm %s980_s18, 8  ;;  %p987_p3 = scmp.lt.s32.totalorder %s980_s18, %s1683_s1 }
  0x5a   : > { %p982_p10 = scmp.ne.s32.totalorder %s980_s18, %s981_s11  ;;  %p988_p0 = scmp.lt.s32.totalorder %s986_s0, %s981_s11 }
  0x5c   : > { %p984_p6 = pnand %p983_p5, %p982_p10  ;;  %p989_p4 = por %p988_p0, %p987_p3 }
  0x5e   : > { %p985_p12 = pneg %p984_p6 }
  0x60   : > { %p990_p9 = pnand %p989_p4, %p985_p12 }
  0x62   : > { %993 = shalt.err (!%p990_p9)
}
  0x63   : > { %782 = dma.hbm_to_vmem [thread:$0]  (!%p1407_p1), %s252_s22, 128, %s254_s21, %s231_s29  }
  0x64   : > { %s299_s13 = scalar_lea.sflag [#allocation12], %s1324_s17  ;;  %319 = sbr.rel (%p1351_p2) target bundleno = 356 (0x164), region = 36 }
  0x65   : > { %791 = dma.hbm_to_vmem [thread:$0]  (!%p1340_p11), %s309_s3, 16, %s311_s15, %s299_s13  }
  0x66   : > { %s1741_s25 = sld [smem:[#allocation23_spill]] (!%p1351_p2) }
  0x6c   : > { %s321_s12 = sand.u32 1, %s1741_s25  }
  0x6d   : > { %s1465_s2 = sshll.u32 %s321_s12, 3  ;;  %s322_s23 = scalar_lea.sflag [#allocation6], %s321_s12 }
  0x6e   : > { %s325_s20 = scalar_lea.vmem [#allocation5], %s1465_s2 }
  0x6f   : > { %1122 = dma.done.wait (%p1381_p13), %s322_s23, 128  }
  0x70   : > { %1124 = vsyncadd (%p1381_p13), %s322_s23, 4294967168  ;;  %s1743_s21 = sld [smem:[#allocation28_spill]] }
  0x71   : > { %s1744_s17 = sld [smem:[#allocation22_spill]] }
  0x76   : > { %s331_s3 = sand.u32 1, %s1743_s21  }
  0x77   : > { %s1474_s22 = sand.u32 1, %s1744_s17   ;;  %s332_s14 = scalar_lea.sflag [#allocation9], %s331_s3 }
  0x78   : > { %s334_s15 = scalar_lea.vmem [#allocation8], %s1474_s22 }
  0x79   : > { %1126 = dma.done.wait (%p1308_p7), %s332_s14, 32  }
  0x7a   : > { %1128 = vsyncadd (%p1308_p7), %s332_s14, 4294967264  ;;  %s343_s27 = scalar_lea.vmem [#allocation10], %s1474_s22  ;;  %s350_s19 = scalar_lea.sflag [#allocation12], %s1474_s22 }
  0x7b   : > { %s352_s29 = scalar_lea.vmem [#allocation11], %s1474_s22 }
  0x7c   : > { %1130 = dma.done.wait (%p1308_p7), %s350_s19, 16  }
  0x7d   : > { %1132 = vsyncadd (%p1308_p7), %s350_s19, 4294967280  ;;  %s755_s18 = sshll.u32 %s1474_s22, 3  ;;  %s1746_s6 = sld [smem:[#allocation24_spill]] }
  0x7e   : > { %s1489_s11 = scalar_lea.vmem [#allocation13], %s755_s18 }
  0x83   : > { %p756_p9 = scmp.ne.s32.totalorder %s1746_s6, 0 }
  0x85   : > { %402 = sbr.rel (%p756_p9) target bundleno = 140 (0x8c), region = 56 }
  0x8a   : > { %v1190_v0 = vmov 0.0  }
  0x8b   : > { %403 = vst [vmem:[#allocation2] sm:$0xff] %v1190_v0 }
  0x8c PF: > { %s1747_s28 = sld [smem:[#allocation25_spill]]  ;;  %v414_v1 = vlaneseq  ;;  %v450_v3 = vld [vmem:[%s352_s29] sm:$0x1] }
  0x8d   : > { %s1748_s0 = sld [smem:[#allocation26_spill]]  ;;  %v468_v4 = vsub.f32 1.0, %v450_v3  ;;  %v1510_v13 = vld [vmem:[%s334_s15] ss:$0 sm:$0xff] }
  0x8e   : > { %s1749_s9 = sld [smem:[#allocation24_spill]]  ;;  %v1495_v2 = vshrl.u32 %v414_v1, 7  ;;  %v1514_v14 = vld [vmem:[%s343_s27] ss:$0 sm:$0xff] }
  0x8f   : > { %v1518_v16 = vperm.slane %v468_v4, 0  ;;  %v1522_v17 = vld [vmem:[%s352_s29] ss:$0 sm:$0xff] }
  0x90   : > { %v430_v5 = vadd.s32 120, %v1495_v2  ;;  %v429_v6 = vadd.s32 112, %v1495_v2  ;;  %v428_v7 = vadd.s32 104, %v1495_v2  ;;  %v427_v8 = vadd.s32 96, %v1495_v2 }
  0x91   : > { %v426_v9 = vadd.s32 88, %v1495_v2  ;;  %v425_v10 = vadd.s32 80, %v1495_v2  ;;  %v424_v11 = vadd.s32 72, %v1495_v2  ;;  %v423_v12 = vadd.s32 64, %v1495_v2 }
  0x92   : > { %s404_s16 = sshra.s32 %s1747_s28, 7  ;;  %s409_s13 = sand.u32 127, %s1747_s28  ;;  %v422_v18 = vadd.s32 56, %v1495_v2  ;;  %v421_v19 = vadd.s32 48, %v1495_v2  ;;  %v420_v40 = vadd.s32 40, %v1495_v2  ;;  %v419_v46 = vadd.s32 32, %v1495_v2 }
  0x93   : > { %s406_s25 = sadd.s32 %s1748_s0, %s404_s16  ;;  %v418_v50 = vadd.s32 24, %v1495_v2  ;;  %v417_v54 = vadd.s32 16, %v1495_v2  ;;  %v416_v61 = vadd.s32 8, %v1495_v2 }
  0x94   : > { %s757_s10 = sshll.u32 %s406_s25, 7  ;;  %p759_p7 = scmp.ne.s32.totalorder %s1749_s9, 1 }
  0x95   : > { %s410_s12 = sadd.s32 %s757_s10, %s409_s13 }
  0x96   : > { %s411_s23 = sld [smem:[#allocation4 + %s410_s12]] }
  0x9c   : > { %s412_s21 = sadd.s32 %s1749_s9, %s411_s23 }
  0x9d   : > { %s758_s17 = sshll.u32 %s412_s21, 7 }
  0x9e   : > { %v1516_v15 = vstv %s758_s17 }
  0x9f   : > { %v447_v20 = vadd.s32 %v1516_v15, %v430_v5  ;;  %v446_v21 = vadd.s32 %v1516_v15, %v429_v6  ;;  %v445_v22 = vadd.s32 %v1516_v15, %v428_v7  ;;  %v444_v23 = vadd.s32 %v1516_v15, %v427_v8 }
  0xa0   : > { %v443_v24 = vadd.s32 %v1516_v15, %v426_v9  ;;  %v442_v25 = vadd.s32 %v1516_v15, %v425_v10  ;;  %v441_v26 = vadd.s32 %v1516_v15, %v424_v11  ;;  %v440_v27 = vadd.s32 %v1516_v15, %v423_v12 }
  0xa1   : > { %vm467_vm0 = vcmp.eq.s32.totalorder %v447_v20, %v1510_v13  ;;  %vm504_vm1 = vcmp.eq.s32.totalorder %v447_v20, %v1514_v14  ;;  %vm466_vm2 = vcmp.eq.s32.totalorder %v446_v21, %v1510_v13  ;;  %vm503_vm3 = vcmp.eq.s32.totalorder %v446_v21, %v1514_v14 }
  0xa2   : > { %v487_v28 = vsel %vm467_vm0, %v1518_v16, 0.0  ;;  %v523_v29 = vsel %vm504_vm1, %v1522_v17, 0.0  ;;  %v486_v30 = vsel %vm466_vm2, %v1518_v16, 0.0  ;;  %v522_v31 = vsel %vm503_vm3, %v1522_v17, 0.0 }
  0xa3   : > { %v539_v32 = vadd.f32 %v523_v29, %v487_v28  ;;  %v538_v33 = vadd.f32 %v522_v31, %v486_v30  ;;  %vm465_vm4 = vcmp.eq.s32.totalorder %v445_v22, %v1510_v13  ;;  %vm502_vm5 = vcmp.eq.s32.totalorder %v445_v22, %v1514_v14  ;;  %v541_v29 = vld [vmem:[%s325_s20] sm:$0xff] }
  0xa4   : > { %v485_v34 = vsel %vm465_vm4, %v1518_v16, 0.0  ;;  %v521_v35 = vsel %vm502_vm5, %v1522_v17, 0.0  ;;  %vm464_vm6 = vcmp.eq.s32.totalorder %v444_v23, %v1510_v13  ;;  %vm501_vm7 = vcmp.eq.s32.totalorder %v444_v23, %v1514_v14 }
  0xa5   : > { %542 = vmatpush.msra.mxu0 %v539_v32  ;;  %v537_v36 = vadd.f32 %v521_v35, %v485_v34  ;;  %v484_v37 = vsel %vm464_vm6, %v1518_v16, 0.0  ;;  %v520_v38 = vsel %vm501_vm7, %v1522_v17, 0.0  ;;  %vm463_vm8 = vcmp.eq.s32.totalorder %v443_v24, %v1510_v13 }
  0xa6   : > { %v483_v39 = vsel %vm463_vm8, %v1518_v16, 0.0  ;;  %vm500_vm9 = vcmp.eq.s32.totalorder %v443_v24, %v1514_v14  ;;  %vm462_vm10 = vcmp.eq.s32.totalorder %v442_v25, %v1510_v13  ;;  %v536_v41 = vadd.f32 %v520_v38, %v484_v37 }
  0xa7   : > { %543 = vmatpush.msra.mxu0 %v538_v33  ;;  %v519_v42 = vsel %vm500_vm9, %v1522_v17, 0.0  ;;  %vm499_vm11 = vcmp.eq.s32.totalorder %v442_v25, %v1514_v14  ;;  %vm461_vm12 = vcmp.eq.s32.totalorder %v441_v26, %v1510_v13  ;;  %v482_v43 = vsel %vm462_vm10, %v1518_v16, 0.0 }
  0xa8   : > { %v518_v44 = vsel %vm499_vm11, %v1522_v17, 0.0  ;;  %vm498_vm13 = vcmp.eq.s32.totalorder %v441_v26, %v1514_v14  ;;  %v535_v45 = vadd.f32 %v519_v42, %v483_v39  ;;  %vm460_vm14 = vcmp.eq.s32.totalorder %v440_v27, %v1510_v13 }
  0xa9   : > { %544 = vmatpush.msra.mxu0 %v537_v36  ;;  %vm497_vm15 = vcmp.eq.s32.totalorder %v440_v27, %v1514_v14  ;;  %v481_v47 = vsel %vm461_vm12, %v1518_v16, 0.0  ;;  %v517_v48 = vsel %vm498_vm13, %v1522_v17, 0.0  ;;  %v439_v49 = vadd.s32 %v1516_v15, %v422_v18 }
  0xaa   : > { %v534_v51 = vadd.f32 %v518_v44, %v482_v43  ;;  %v438_v52 = vadd.s32 %v1516_v15, %v421_v19  ;;  %v437_v53 = vadd.s32 %v1516_v15, %v420_v40  ;;  %v480_v55 = vsel %vm460_vm14, %v1518_v16, 0.0 }
  0xab   : > { %545 = vmatpush.msra.mxu0 %v536_v41  ;;  %v516_v56 = vsel %vm497_vm15, %v1522_v17, 0.0  ;;  %vm459_vm0 = vcmp.eq.s32.totalorder %v439_v49, %v1510_v13  ;;  %vm496_vm1 = vcmp.eq.s32.totalorder %v439_v49, %v1514_v14  ;;  %v533_v57 = vadd.f32 %v517_v48, %v481_v47 }
  0xac   : > { %vm458_vm2 = vcmp.eq.s32.totalorder %v438_v52, %v1510_v13  ;;  %vm495_vm3 = vcmp.eq.s32.totalorder %v438_v52, %v1514_v14  ;;  %v436_v58 = vadd.s32 %v1516_v15, %v419_v46  ;;  %v479_v59 = vsel %vm459_vm0, %v1518_v16, 0.0 }
  0xad   : > { %546 = vmatpush.msra.mxu0 %v535_v45  ;;  %v515_v60 = vsel %vm496_vm1, %v1522_v17, 0.0  ;;  %v532_v62 = vadd.f32 %v516_v56, %v480_v55  ;;  %vm457_vm4 = vcmp.eq.s32.totalorder %v437_v53, %v1510_v13  ;;  %vm494_vm5 = vcmp.eq.s32.totalorder %v437_v53, %v1514_v14 }
  0xae   : > { %v435_v63 = vadd.s32 %v1516_v15, %v418_v50  ;;  %v478_v0 = vsel %vm458_vm2, %v1518_v16, 0.0  ;;  %v514_v1 = vsel %vm495_vm3, %v1522_v17, 0.0  ;;  %v531_v3 = vadd.f32 %v515_v60, %v479_v59 }
  0xaf   : > { %547 = vmatpush.msra.mxu0 %v534_v51  ;;  %vm456_vm6 = vcmp.eq.s32.totalorder %v436_v58, %v1510_v13  ;;  %vm493_vm7 = vcmp.eq.s32.totalorder %v436_v58, %v1514_v14  ;;  %v434_v4 = vadd.s32 %v1516_v15, %v417_v54  ;;  %v477_v5 = vsel %vm457_vm4, %v1518_v16, 0.0 }
  0xb0   : > { %v513_v6 = vsel %vm494_vm5, %v1522_v17, 0.0  ;;  %v530_v7 = vadd.f32 %v514_v1, %v478_v0  ;;  %vm455_vm8 = vcmp.eq.s32.totalorder %v435_v63, %v1510_v13  ;;  %vm492_vm9 = vcmp.eq.s32.totalorder %v435_v63, %v1514_v14 }
  0xb1   : > { %548 = vmatpush.msra.mxu0 %v533_v57  ;;  %v433_v8 = vadd.s32 %v1516_v15, %v416_v61  ;;  %v476_v9 = vsel %vm456_vm6, %v1518_v16, 0.0  ;;  %v512_v10 = vsel %vm493_vm7, %v1522_v17, 0.0  ;;  %v529_v11 = vadd.f32 %v513_v6, %v477_v5 }
  0xb2   : > { %vm454_vm10 = vcmp.eq.s32.totalorder %v434_v4, %v1510_v13  ;;  %vm491_vm11 = vcmp.eq.s32.totalorder %v434_v4, %v1514_v14  ;;  %v432_v12 = vadd.s32 %v1516_v15, %v1495_v2  ;;  %v475_v18 = vsel %vm455_vm8, %v1518_v16, 0.0 }
  0xb3   : > { %549 = vmatpush.msra.mxu0 %v532_v62  ;;  %v511_v19 = vsel %vm492_vm9, %v1522_v17, 0.0  ;;  %v528_v20 = vadd.f32 %v512_v10, %v476_v9  ;;  %vm453_vm12 = vcmp.eq.s32.totalorder %v433_v8, %v1510_v13  ;;  %vm490_vm13 = vcmp.eq.s32.totalorder %v433_v8, %v1514_v14 }
  0xb4   : > { %v474_v21 = vsel %vm454_vm10, %v1518_v16, 0.0  ;;  %v510_v22 = vsel %vm491_vm11, %v1522_v17, 0.0  ;;  %v527_v23 = vadd.f32 %v511_v19, %v475_v18  ;;  %vm452_vm14 = vcmp.eq.s32.totalorder %v432_v12, %v1510_v13  ;;  %v540_v13 = vld [vmem:[#allocation2] sm:$0xff] }
  0xb5   : > { %550 = vmatpush.msra.mxu0 %v531_v3  ;;  %vm489_vm15 = vcmp.eq.s32.totalorder %v432_v12, %v1514_v14  ;;  %v473_v2 = vsel %vm453_vm12, %v1518_v16, 0.0  ;;  %v509_v15 = vsel %vm490_vm13, %v1522_v17, 0.0  ;;  %v526_v24 = vadd.f32 %v510_v22, %v474_v21 }
  0xb6   : > { %v472_v25 = vsel %vm452_vm14, %v1518_v16, 0.0  ;;  %v508_v26 = vsel %vm489_vm15, %v1522_v17, 0.0  ;;  %v525_v27 = vadd.f32 %v509_v15, %v473_v2 }
  0xb7   : > { %551 = vmatpush.msra.mxu0 %v530_v7  ;;  %v524_v28 = vadd.f32 %v508_v26, %v472_v25 }
  0xb9   : > { %552 = vmatpush.msra.mxu0 %v529_v11 }
  0xbb   : > { %553 = vmatpush.msra.mxu0 %v528_v20 }
  0xbd   : > { %554 = vmatpush.msra.mxu0 %v527_v23 }
  0xbf   : > { %555 = vmatpush.msra.mxu0 %v526_v24 }
  0xc1   : > { %556 = vmatpush.msra.mxu0 %v525_v27 }
  0xc3   : > { %557 = vmatpush.msra.mxu0 %v524_v28 }
  0xc4   : > { %558 = vmatmul.f32.vlgmr.msra.gmra.mxu0 %v541_v29 }
 0x140   : > { %567 = sbr.rel (%p759_p7) target bundleno = 333 (0x14d), region = 60 }
 0x141   : > { %v559_v14 = vpop.f32.mrf.mxu0 }
 0x142   : > { %v562_v30 = vadd.f32 %v559_v14, %v540_v13 }
 0x144   : > { %563 = vst [vmem:[#allocation2] sm:$0xff] %v562_v30 }
 0x14b   : > { %v568_v31 = vld [vmem:[#allocation2] sm:$0xff] }
 0x14c   : > { %569 = vst [vmem:[%s1489_s11] sm:$0xff] %v568_v31 }
 0x14d PF: > { %s1750_s5 = sld [smem:[#allocation26_spill]]  ;;  %s585_s15 = sshll.u32 %s1489_s11, 4  ;;  %s586_s15 = int_to_ptr.vmem [resolvable:$true] %s585_s15 }
 0x14e   : > { %s1751_s3 = sld [smem:[#allocation25_spill]]  ;;  %s571_s0 = scalar_lea.sflag [#allocation7], %s1474_s22 }
 0x14f   : > { %s1753_s18 = sld [smem:[#allocation40_spill]] }
 0x153   : > { %s761_s2 = sshll.u32 %s1750_s5, 1 }
 0x154   : > { %s581_s20 = sadd.s32 %s1751_s3, %s761_s2 }
 0x155   : > { %s762_s27 = sshll.u32 %s581_s20, 3  ;;  %s1059_s11 = scalar_lea.hbm %s1753_s18, 32 }
 0x156   : > { %s583_s6 = scalar_lea.hbm %s1753_s18, %s762_s27 }
 0x157   : > { %s587_s28 = sshll.u32 %s583_s6, 4  ;;  %s588_s28 = int_to_ptr.hbm [resolvable:$true] %s587_s28 }
 0x158   : > { %s1053_s9 = sshra.s32 %s588_s28, 4  ;;  %s1054_s9 = int_to_ptr.hbm [resolvable:$true] %s1053_s9 }
 0x159   : > { %s1055_s16 = scalar_lea.hbm %s1054_s9, 8  ;;  %p1060_p1 = scmp.lt.s32.totalorder %s1054_s9, %s1753_s18 }
 0x15a   : > { %p1056_p11 = scmp.ne.s32.totalorder %s1054_s9, %s1055_s16  ;;  %p1061_p10 = scmp.lt.s32.totalorder %s1059_s11, %s1055_s16 }
 0x15c   : > { %p1057_p2 = pnand %p1056_p11, %p1312_p8  ;;  %p1062_p5 = por %p1061_p10, %p1060_p1 }
 0x15e   : > { %p1058_p13 = pneg %p1057_p2 }
 0x160   : > { %p1063_p6 = pnand %p1062_p5, %p1058_p13 }
 0x162   : > { %1066 = shalt.err (!%p1063_p6)
}
 0x163   : > { %775 = dma.vmem_to_hbm [thread:$0]  (%p1312_p8), %s586_s15, 128, %s588_s28, %s571_s0  }
 0x164 PF: > { %s1754_s22 = sld [smem:[#allocation21_spill]]  ;;  %p797_p12 = scmp.ge.s32.totalorder %s1187_s8, 2 }
 0x165   : > { %s1755_s23 = sld [smem:[#allocation31_spill]] }
 0x16a   : > { %s599_s21 = sand.u32 1, %s1754_s22  }
 0x16b   : > { %p1756_p3 = scmp.ne.s32.totalorder %s1755_s23, 0  ;;  %s600_s17 = scalar_lea.sflag [#allocation7], %s599_s21 }
 0x16d   : > { %p793_p0 = pnand %p797_p12, %p1756_p3 }
 0x16f   : > { %p794_p4 = pneg %p793_p0 }
 0x171   : > { %1134 = dma.done.wait (%p794_p4), %s600_s17, 128  }
 0x172   : > { %1136 = vsyncadd (%p794_p4), %s600_s17, 4294967168  ;;  %s35_s8 = sadd.s32 1, %s1187_s8   ;;  %s1758_s22 = sld [smem:[#allocation22_spill]] }
 0x173   : > { %p1638_p9 = scmp.ge.s32.totalorder %s35_s8, 10   ;;  %s1759_s3 = sld [smem:[#allocation36_spill]] }
 0x174   : > { %s1760_s0 = sld [smem:[#allocation23_spill]]  ;;  %s1766_s23 = smov %s1147_s24 }
 0x175   : > { %s1761_s14 = sld [smem:[#allocation37_spill]]  ;;  %s1768_s25 = smov %s1159_s26 }
 0x176   : > { %s1762_s28 = sld [smem:[#allocation27_spill]]  ;;  %s1770_s27 = smov %s1175_s30 }
 0x177   : > { %s1763_s2 = sld [smem:[#allocation32_spill]]  ;;  %s1771_s29 = smov %s1183_s7 }
 0x178   : > { %s1764_s6 = sld [smem:[#allocation33_spill]] }
 0x179   : > { %s1765_s20 = sld [smem:[#allocation34_spill]]  ;;  %s1767_s24 = smov %s1759_s3 }
 0x17b   : > { %s1769_s26 = smov %s1761_s14  ;;  %34 = sbr.rel (!%p1638_p9) target bundleno = 22 (0x16), region = 126 }
 0x17d   : > { %s1772_s30 = smov %s1763_s2 }
 0x17f   : > { %s1773_s7 = smov %s1765_s20 }
 0x180   :  { %606 = vsyncpa [#allocation6], 1 }
 0x181   :  { %608 = vsyncpa [#allocation6 + $0x1], 1 }
 0x182   :  { %609 = vsyncpa [#allocation9], 1 }
 0x183   :  { %611 = vsyncpa [#allocation9 + $0x1], 1 }
 0x184   :  { %612 = vsyncpa [#allocation12], 1 }
 0x185   :  { %614 = vsyncpa [#allocation12 + $0x1], 1 }
 0x186   :  { %615 = vsyncpa [#allocation7], 1 }
 0x187   :  { %617 = vsyncpa [#allocation7 + $0x1], 1 }

</bundles_post_ra>
